<compile_context>
chip_gen: v6e
topology: v6e:2x2x1
jax: 0.10.0
libtpu: 0.0.40
codegen_flags: <defaults>
</compile_context>

<pallas_src>
import functools

import numpy as np
import jax
import jax.numpy as jnp
from jax import lax
from jax.experimental import pallas as pl
from jax.experimental.pallas import tpu as pltpu

_BN_EPS = 1e-5  # PyTorch BatchNorm2d default


def _relu6(x):
    return jnp.minimum(jnp.maximum(x, 0.0), 6.0)


def _extra_block_dw_kernel(x_ref, w1_ref, w3_ref, consts_ref, masks_ref, o_ref,
                           *, W, mm_dtype):
    """One grid step == one lane-dense slab of nb samples.

    x_ref:      (Cin, L)  input slab, L = nb*H*W on the lane axis
    w1_ref:     (C2, Cin) BN-folded pointwise weight, channel expansion folded in
    w3_ref:     (C2, C2)  BN-folded final 1x1 weight
    consts_ref: (C2, 12)  [depthwise taps t=0..8 | b1 | b2 | b3] (BN-folded)
    masks_ref:  (9, L)    per-tap zero-pad / cross-sample boundary masks
    o_ref:      (C2, L)   output slab at full spatial resolution
    """
    x = x_ref[...]
    consts = consts_ref[...]
    masks = masks_ref[...]
    L = x.shape[1]

    b1 = consts[:, 9:10]
    b2 = consts[:, 10:11]
    b3 = consts[:, 11:12]

    # ---- pointwise 1x1 conv + folded BN + ReLU6 (single MXU matmul) ---------
    y1 = jnp.dot(w1_ref[...].astype(mm_dtype), x.astype(mm_dtype),
                 preferred_element_type=jnp.float32) + b1
    y1 = _relu6(y1)                                            # (C2, L)

    # ---- 3x3 depthwise conv + folded BN + ReLU6 -----------------------------
    # Each non-center tap is a lane roll of y1 (XLU slot), zeroed at picture /
    # sample boundaries by a precomputed mask, then a per-channel MAC (VPU).
    acc = consts[:, 4:5] * y1 + b2                             # center tap + bias
    for dh in (-1, 0, 1):
        for dw in (-1, 0, 1):
            if dh == 0 and dw == 0:
                continue
            t = (dh + 1) * 3 + (dw + 1)
            shifted = pltpu.roll(y1, shift=(-(dh * W + dw)) % L, axis=1)
            acc = acc + consts[:, t:t + 1] * (shifted * masks[t:t + 1, :])
    y2 = _relu6(acc)                                           # (C2, L)

    # ---- final 1x1 conv + folded BN + ReLU6 ---------------------------------
    y3 = jnp.dot(w3_ref[...].astype(mm_dtype), y2.astype(mm_dtype),
                 preferred_element_type=jnp.float32) + b3
    o_ref[...] = _relu6(y3)


def _pick_samples_per_block(N, HW):
    # Prefer >= 2 grid steps (v7x has 2 TensorCores) while keeping each block's
    # lane width a multiple of 128 (lane-dense loads/stores).
    for nb in range(N // 2, 0, -1):
        if N % nb == 0 and (nb * HW) % 128 == 0:
            return nb
    return N


def extra_block_dw_pallas(x_nchw, params, stride, samples_per_block=None,
                          matmul_dtype=jnp.bfloat16):
    """ExtraBlockDW forward. x_nchw: (N, Cin, H, W) float32.

    params: raw PyTorch-layout conv weights + BN stats (see _make_params).
    """
    N, Cin, H, W = x_nchw.shape
    C1 = params["pw_w"].shape[0]
    C2 = params["dw_w"].shape[0]
    assert C2 % C1 == 0, "depthwise out-channels must be a multiple of ch_1"
    m = C2 // C1
    HW = H * W

    nb = (samples_per_block if samples_per_block is not None
          else _pick_samples_per_block(N, HW))
    assert N % nb == 0, "samples_per_block must divide the batch"
    L = nb * HW
    assert nb == N or L % 128 == 0, "per-block lane width must be a multiple of 128"

    # ---- fold BatchNorm (eval mode) into conv weights / biases --------------
    def fold_bn(w2d, bn):
        gamma, beta, mean, var = bn
        scale = gamma / jnp.sqrt(var + _BN_EPS)
        return w2d * scale[:, None], (beta - mean * scale)[:, None]

    w1, b1 = fold_bn(params["pw_w"].reshape(C1, Cin).astype(jnp.float32), params["pw_bn"])
    wdw, b2 = fold_bn(params["dw_w"].reshape(C2, 9).astype(jnp.float32), params["dw_bn"])
    w3, b3 = fold_bn(params["nc_w"].reshape(C2, C2).astype(jnp.float32), params["nc_bn"])

    # Fold the grouped-conv channel expansion (depthwise out channel j reads
    # pointwise channel j // m) into the pointwise conv: duplicating rows
    # commutes with ReLU6, so this is exact.
    if m > 1:
        w1 = jnp.repeat(w1, m, axis=0)                          # (C2, Cin)
        b1 = jnp.repeat(b1, m, axis=0)                          # (C2, 1)

    consts = jnp.concatenate([wdw, b1, b2, b3], axis=1)         # (C2, 12)

    # ---- per-tap boundary masks (zero padding; also isolate packed samples) -
    hh, ww = np.meshgrid(np.arange(H), np.arange(W), indexing="ij")
    rows = []
    for dh in (-1, 0, 1):
        for dw in (-1, 0, 1):
            inside = (hh + dh >= 0) & (hh + dh < H) & (ww + dw >= 0) & (ww + dw < W)
            rows.append(inside.reshape(-1))
    masks = jnp.asarray(np.tile(np.stack(rows).astype(np.float32), (1, nb)))  # (9, L)

    # ---- channel-major lane-dense slab: (Cin, N*H*W) -------------------------
    x = x_nchw.reshape(N, Cin, HW).astype(jnp.float32)
    x = x.transpose(1, 0, 2).reshape(Cin, N * HW)

    kernel = functools.partial(_extra_block_dw_kernel, W=W, mm_dtype=matmul_dtype)

    out = pl.pallas_call(
        kernel,
        out_shape=jax.ShapeDtypeStruct((C2, N * HW), jnp.float32),
        grid_spec=pltpu.PrefetchScalarGridSpec(
            num_scalar_prefetch=0,
            grid=(N // nb,),
            in_specs=[
                pl.BlockSpec((Cin, L), lambda n: (0, n)),
                pl.BlockSpec((C2, Cin), lambda n: (0, 0)),
                pl.BlockSpec((C2, C2), lambda n: (0, 0)),
                pl.BlockSpec((C2, 12), lambda n: (0, 0)),
                pl.BlockSpec((9, L), lambda n: (0, 0)),
            ],
            out_specs=pl.BlockSpec((C2, L), lambda n: (0, n)),
        ),
        compiler_params=pltpu.CompilerParams(
            dimension_semantics=("parallel",)),
    )(x, w1, w3, consts, masks)

    # (C2, N*H*W) -> NCHW, then stride-subsample (exact: subsampling commutes
    # with the pointwise ops and the masked tap sum).
    out = out.reshape(C2, N, H, W).transpose(1, 0, 2, 3)
    if stride > 1:
        out = out[:, :, ::stride, ::stride]
    return out


def extra_block_dw_ref(x_nchw, params, stride):
    """Pure-JAX/XLA reference matching the PyTorch forward (eval-mode BN)."""
    def bn(y, p):
        gamma, beta, mean, var = p
        inv = gamma / jnp.sqrt(var + _BN_EPS)
        return y * inv[None, :, None, None] + (beta - mean * inv)[None, :, None, None]

    def conv(y, w, s=1, groups=1):
        pad = w.shape[2] // 2
        return lax.conv_general_dilated(
            y, w, window_strides=(s, s), padding=[(pad, pad), (pad, pad)],
            dimension_numbers=("NCHW", "OIHW", "NCHW"),
            feature_group_count=groups, precision=lax.Precision.HIGHEST)

    C1 = params["pw_w"].shape[0]
    y = _relu6(bn(conv(x_nchw, params["pw_w"]), params["pw_bn"]))
    y = _relu6(bn(conv(y, params["dw_w"], s=stride, groups=C1), params["dw_bn"]))
    y = _relu6(bn(conv(y, params["nc_w"]), params["nc_bn"]))
    return y


def _make_params(key, in_c, ch_1, ch_2):
    ks = jax.random.split(key, 6)

    def bn_params(k, c):
        k1, k2, k3, k4 = jax.random.split(k, 4)
        gamma = 1.0 + 0.1 * jax.random.normal(k1, (c,), jnp.float32)
        beta = 0.1 * jax.random.normal(k2, (c,), jnp.float32)
        mean = 0.1 * jax.random.normal(k3, (c,), jnp.float32)
        var = 0.5 + jax.random.uniform(k4, (c,), jnp.float32)
        return (gamma, beta, mean, var)

    return {
        # PyTorch layouts: Conv2d weight (out, in/groups, kh, kw), bias=False.
        "pw_w": 0.25 * jax.random.normal(ks[0], (ch_1, in_c, 1, 1), jnp.float32),
        "pw_bn": bn_params(ks[1], ch_1),
        "dw_w": 0.25 * jax.random.normal(ks[2], (ch_2, 1, 3, 3), jnp.float32),
        "dw_bn": bn_params(ks[3], ch_2),
        "nc_w": 0.25 * jax.random.normal(ks[4], (ch_2, ch_2, 1, 1), jnp.float32),
        "nc_bn": bn_params(ks[5], ch_2),
    }


if __name__ == "__main__":
    key = jax.random.PRNGKey(0)
    kp_a, kx_a, kp_b, kx_b = jax.random.split(key, 4)

    def check(x, params, stride, expect_shape, samples_per_block=None):
        out = jax.block_until_ready(
            extra_block_dw_pallas(x, params, stride,
                                  samples_per_block=samples_per_block))
        ref = extra_block_dw_ref(x, params, stride)
        assert out.shape == expect_shape and ref.shape == expect_shape, (
            out.shape, ref.shape, expect_shape)
        err = float(jnp.max(jnp.abs(out - ref)))
        # bf16 MXU operands (f32 accumulate) vs HIGHEST-precision reference.
        assert err < 5e-2, f"max abs error {err}"

    # Config A: typical downsampling extra block (stride=2, ch_2 == ch_1).
    in_c, ch_1, ch_2 = 8, 16, 16
    params_a = _make_params(kp_a, in_c, ch_1, ch_2)
    x_a = jax.random.normal(kx_a, (2, in_c, 16, 16), jnp.float32)
    check(x_a, params_a, stride=2, expect_shape=(2, ch_2, 8, 8))

    # Config B: stride=1, depthwise channel multiplier 2, 2 samples per block.
    in_c, ch_1, ch_2 = 8, 8, 16
    params_b = _make_params(kp_b, in_c, ch_1, ch_2)
    x_b = jax.random.normal(kx_b, (4, in_c, 16, 16), jnp.float32)
    check(x_b, params_b, stride=1, expect_shape=(4, ch_2, 16, 16),
          samples_per_block=2)

    print("KERNEL_OK")
</pallas_src>

<mosaic_0001>
module attributes {stable_mosaic.version = 11 : i64} {
  func.func @_extra_block_dw_kernel(%arg0: i32, %arg1: memref<8x256xf32, #tpu.memory_space<vmem>>, %arg2: memref<16x8xf32, #tpu.memory_space<vmem>>, %arg3: memref<16x16xf32, #tpu.memory_space<vmem>>, %arg4: memref<16x12xf32, #tpu.memory_space<vmem>>, %arg5: memref<9x256xf32, #tpu.memory_space<vmem>>, %arg6: memref<16x256xf32, #tpu.memory_space<vmem>>) attributes {dimension_semantics = [#tpu.dimension_semantics<parallel>], iteration_bounds = array<i64: 2>, scalar_prefetch = 0 : i64, scratch_operands = 0 : i64, tpu.core_type = #tpu.core_type<tc>, window_params = [{transform_indices = @transform_0, window_bounds = array<i64: 8, 256>}, {pipeline_mode = #tpu.pipeline_mode<synchronous>, transform_indices = @transform_1, window_bounds = array<i64: 16, 8>}, {pipeline_mode = #tpu.pipeline_mode<synchronous>, transform_indices = @transform_2, window_bounds = array<i64: 16, 16>}, {pipeline_mode = #tpu.pipeline_mode<synchronous>, transform_indices = @transform_3, window_bounds = array<i64: 16, 12>}, {pipeline_mode = #tpu.pipeline_mode<synchronous>, transform_indices = @transform_4, window_bounds = array<i64: 9, 256>}, {transform_indices = @transform_5, window_bounds = array<i64: 16, 256>}]} {
    %c0 = arith.constant 0 : index
    %c0_0 = arith.constant 0 : index
    %0 = vector.load %arg1[%c0, %c0_0] : memref<8x256xf32, #tpu.memory_space<vmem>>, vector<8x256xf32>
    %c0_1 = arith.constant 0 : index
    %c0_2 = arith.constant 0 : index
    %1 = vector.load %arg4[%c0_1, %c0_2] : memref<16x12xf32, #tpu.memory_space<vmem>>, vector<16x12xf32>
    %c0_3 = arith.constant 0 : index
    %c0_4 = arith.constant 0 : index
    %2 = vector.load %arg5[%c0_3, %c0_4] : memref<9x256xf32, #tpu.memory_space<vmem>>, vector<9x256xf32>
    %3 = vector.extract_strided_slice %1 {offsets = [0, 9], sizes = [16, 1], strides = [1, 1]} : vector<16x12xf32> to vector<16x1xf32>
    %4 = vector.extract_strided_slice %1 {offsets = [0, 10], sizes = [16, 1], strides = [1, 1]} : vector<16x12xf32> to vector<16x1xf32>
    %5 = vector.extract_strided_slice %1 {offsets = [0, 11], sizes = [16, 1], strides = [1, 1]} : vector<16x12xf32> to vector<16x1xf32>
    %c0_5 = arith.constant 0 : index
    %c0_6 = arith.constant 0 : index
    %6 = vector.load %arg2[%c0_5, %c0_6] : memref<16x8xf32, #tpu.memory_space<vmem>>, vector<16x8xf32>
    %7 = arith.truncf %6 : vector<16x8xf32> to vector<16x8xbf16>
    %8 = arith.truncf %0 : vector<8x256xf32> to vector<8x256xbf16>
    %cst = arith.constant dense<0.000000e+00> : vector<16x256xf32>
    %9 = tpu.matmul %7, %8, %cst {dimension_numbers = #tpu.dot_dimension_numbers<[1], [0], [0], [1], [0, 0, 1, 1], [], []>} : vector<16x8xbf16>, vector<8x256xbf16>, vector<16x256xf32> -> vector<16x256xf32>
    %10 = vector.broadcast %3 : vector<16x1xf32> to vector<16x256xf32>
    %11 = arith.addf %9, %10 : vector<16x256xf32>
    %cst_7 = arith.constant 0.000000e+00 : f32
    %12 = vector.broadcast %cst_7 : f32 to vector<16x256xf32>
    %13 = arith.maximumf %11, %12 : vector<16x256xf32>
    %cst_8 = arith.constant 6.000000e+00 : f32
    %14 = vector.broadcast %cst_8 : f32 to vector<16x256xf32>
    %15 = arith.minimumf %13, %14 : vector<16x256xf32>
    %16 = vector.extract_strided_slice %1 {offsets = [0, 4], sizes = [16, 1], strides = [1, 1]} : vector<16x12xf32> to vector<16x1xf32>
    %17 = vector.broadcast %16 : vector<16x1xf32> to vector<16x256xf32>
    %18 = arith.mulf %17, %15 : vector<16x256xf32>
    %19 = vector.broadcast %4 : vector<16x1xf32> to vector<16x256xf32>
    %20 = arith.addf %18, %19 : vector<16x256xf32>
    %c17_i32 = arith.constant 17 : i32
    %21 = tpu.dynamic_rotate %15 by %c17_i32 dim 1 : vector<16x256xf32>, i32 -> vector<16x256xf32>
    %22 = vector.extract_strided_slice %1 {offsets = [0, 0], sizes = [16, 1], strides = [1, 1]} : vector<16x12xf32> to vector<16x1xf32>
    %23 = vector.extract_strided_slice %2 {offsets = [0, 0], sizes = [1, 256], strides = [1, 1]} : vector<9x256xf32> to vector<1x256xf32>
    %24 = vector.broadcast %23 : vector<1x256xf32> to vector<16x256xf32>
    %25 = arith.mulf %21, %24 : vector<16x256xf32>
    %26 = vector.broadcast %22 : vector<16x1xf32> to vector<16x256xf32>
    %27 = arith.mulf %26, %25 : vector<16x256xf32>
    %28 = arith.addf %20, %27 : vector<16x256xf32>
    %c16_i32 = arith.constant 16 : i32
    %29 = tpu.dynamic_rotate %15 by %c16_i32 dim 1 : vector<16x256xf32>, i32 -> vector<16x256xf32>
    %30 = vector.extract_strided_slice %1 {offsets = [0, 1], sizes = [16, 1], strides = [1, 1]} : vector<16x12xf32> to vector<16x1xf32>
    %31 = vector.extract_strided_slice %2 {offsets = [1, 0], sizes = [1, 256], strides = [1, 1]} : vector<9x256xf32> to vector<1x256xf32>
    %32 = vector.broadcast %31 : vector<1x256xf32> to vector<16x256xf32>
    %33 = arith.mulf %29, %32 : vector<16x256xf32>
    %34 = vector.broadcast %30 : vector<16x1xf32> to vector<16x256xf32>
    %35 = arith.mulf %34, %33 : vector<16x256xf32>
    %36 = arith.addf %28, %35 : vector<16x256xf32>
    %c15_i32 = arith.constant 15 : i32
    %37 = tpu.dynamic_rotate %15 by %c15_i32 dim 1 : vector<16x256xf32>, i32 -> vector<16x256xf32>
    %38 = vector.extract_strided_slice %1 {offsets = [0, 2], sizes = [16, 1], strides = [1, 1]} : vector<16x12xf32> to vector<16x1xf32>
    %39 = vector.extract_strided_slice %2 {offsets = [2, 0], sizes = [1, 256], strides = [1, 1]} : vector<9x256xf32> to vector<1x256xf32>
    %40 = vector.broadcast %39 : vector<1x256xf32> to vector<16x256xf32>
    %41 = arith.mulf %37, %40 : vector<16x256xf32>
    %42 = vector.broadcast %38 : vector<16x1xf32> to vector<16x256xf32>
    %43 = arith.mulf %42, %41 : vector<16x256xf32>
    %44 = arith.addf %36, %43 : vector<16x256xf32>
    %c1_i32 = arith.constant 1 : i32
    %45 = tpu.dynamic_rotate %15 by %c1_i32 dim 1 : vector<16x256xf32>, i32 -> vector<16x256xf32>
    %46 = vector.extract_strided_slice %1 {offsets = [0, 3], sizes = [16, 1], strides = [1, 1]} : vector<16x12xf32> to vector<16x1xf32>
    %47 = vector.extract_strided_slice %2 {offsets = [3, 0], sizes = [1, 256], strides = [1, 1]} : vector<9x256xf32> to vector<1x256xf32>
    %48 = vector.broadcast %47 : vector<1x256xf32> to vector<16x256xf32>
    %49 = arith.mulf %45, %48 : vector<16x256xf32>
    %50 = vector.broadcast %46 : vector<16x1xf32> to vector<16x256xf32>
    %51 = arith.mulf %50, %49 : vector<16x256xf32>
    %52 = arith.addf %44, %51 : vector<16x256xf32>
    %c255_i32 = arith.constant 255 : i32
    %53 = tpu.dynamic_rotate %15 by %c255_i32 dim 1 : vector<16x256xf32>, i32 -> vector<16x256xf32>
    %54 = vector.extract_strided_slice %1 {offsets = [0, 5], sizes = [16, 1], strides = [1, 1]} : vector<16x12xf32> to vector<16x1xf32>
    %55 = vector.extract_strided_slice %2 {offsets = [5, 0], sizes = [1, 256], strides = [1, 1]} : vector<9x256xf32> to vector<1x256xf32>
    %56 = vector.broadcast %55 : vector<1x256xf32> to vector<16x256xf32>
    %57 = arith.mulf %53, %56 : vector<16x256xf32>
    %58 = vector.broadcast %54 : vector<16x1xf32> to vector<16x256xf32>
    %59 = arith.mulf %58, %57 : vector<16x256xf32>
    %60 = arith.addf %52, %59 : vector<16x256xf32>
    %c241_i32 = arith.constant 241 : i32
    %61 = tpu.dynamic_rotate %15 by %c241_i32 dim 1 : vector<16x256xf32>, i32 -> vector<16x256xf32>
    %62 = vector.extract_strided_slice %1 {offsets = [0, 6], sizes = [16, 1], strides = [1, 1]} : vector<16x12xf32> to vector<16x1xf32>
    %63 = vector.extract_strided_slice %2 {offsets = [6, 0], sizes = [1, 256], strides = [1, 1]} : vector<9x256xf32> to vector<1x256xf32>
    %64 = vector.broadcast %63 : vector<1x256xf32> to vector<16x256xf32>
    %65 = arith.mulf %61, %64 : vector<16x256xf32>
    %66 = vector.broadcast %62 : vector<16x1xf32> to vector<16x256xf32>
    %67 = arith.mulf %66, %65 : vector<16x256xf32>
    %68 = arith.addf %60, %67 : vector<16x256xf32>
    %c240_i32 = arith.constant 240 : i32
    %69 = tpu.dynamic_rotate %15 by %c240_i32 dim 1 : vector<16x256xf32>, i32 -> vector<16x256xf32>
    %70 = vector.extract_strided_slice %1 {offsets = [0, 7], sizes = [16, 1], strides = [1, 1]} : vector<16x12xf32> to vector<16x1xf32>
    %71 = vector.extract_strided_slice %2 {offsets = [7, 0], sizes = [1, 256], strides = [1, 1]} : vector<9x256xf32> to vector<1x256xf32>
    %72 = vector.broadcast %71 : vector<1x256xf32> to vector<16x256xf32>
    %73 = arith.mulf %69, %72 : vector<16x256xf32>
    %74 = vector.broadcast %70 : vector<16x1xf32> to vector<16x256xf32>
    %75 = arith.mulf %74, %73 : vector<16x256xf32>
    %76 = arith.addf %68, %75 : vector<16x256xf32>
    %c239_i32 = arith.constant 239 : i32
    %77 = tpu.dynamic_rotate %15 by %c239_i32 dim 1 : vector<16x256xf32>, i32 -> vector<16x256xf32>
    %78 = vector.extract_strided_slice %1 {offsets = [0, 8], sizes = [16, 1], strides = [1, 1]} : vector<16x12xf32> to vector<16x1xf32>
    %79 = vector.extract_strided_slice %2 {offsets = [8, 0], sizes = [1, 256], strides = [1, 1]} : vector<9x256xf32> to vector<1x256xf32>
    %80 = vector.broadcast %79 : vector<1x256xf32> to vector<16x256xf32>
    %81 = arith.mulf %77, %80 : vector<16x256xf32>
    %82 = vector.broadcast %78 : vector<16x1xf32> to vector<16x256xf32>
    %83 = arith.mulf %82, %81 : vector<16x256xf32>
    %84 = arith.addf %76, %83 : vector<16x256xf32>
    %cst_9 = arith.constant 0.000000e+00 : f32
    %85 = vector.broadcast %cst_9 : f32 to vector<16x256xf32>
    %86 = arith.maximumf %84, %85 : vector<16x256xf32>
    %cst_10 = arith.constant 6.000000e+00 : f32
    %87 = vector.broadcast %cst_10 : f32 to vector<16x256xf32>
    %88 = arith.minimumf %86, %87 : vector<16x256xf32>
    %c0_11 = arith.constant 0 : index
    %c0_12 = arith.constant 0 : index
    %89 = vector.load %arg3[%c0_11, %c0_12] : memref<16x16xf32, #tpu.memory_space<vmem>>, vector<16x16xf32>
    %90 = arith.truncf %89 : vector<16x16xf32> to vector<16x16xbf16>
    %91 = arith.truncf %88 : vector<16x256xf32> to vector<16x256xbf16>
    %cst_13 = arith.constant dense<0.000000e+00> : vector<16x256xf32>
    %92 = tpu.matmul %90, %91, %cst_13 {dimension_numbers = #tpu.dot_dimension_numbers<[1], [0], [0], [1], [0, 0, 1, 1], [], []>} : vector<16x16xbf16>, vector<16x256xbf16>, vector<16x256xf32> -> vector<16x256xf32>
    %93 = vector.broadcast %5 : vector<16x1xf32> to vector<16x256xf32>
    %94 = arith.addf %92, %93 : vector<16x256xf32>
    %cst_14 = arith.constant 0.000000e+00 : f32
    %95 = vector.broadcast %cst_14 : f32 to vector<16x256xf32>
    %96 = arith.maximumf %94, %95 : vector<16x256xf32>
    %cst_15 = arith.constant 6.000000e+00 : f32
    %97 = vector.broadcast %cst_15 : f32 to vector<16x256xf32>
    %98 = arith.minimumf %96, %97 : vector<16x256xf32>
    %c0_16 = arith.constant 0 : index
    %c0_17 = arith.constant 0 : index
    %99 = vector.load %arg6[%c0_16, %c0_17] : memref<16x256xf32, #tpu.memory_space<vmem>>, vector<16x256xf32>
    tpu.vector_store %arg6[%c0_16, %c0_17], %98 {strides = array<i32>} : memref<16x256xf32, #tpu.memory_space<vmem>>, vector<16x256xf32>,
    return
  }
  func.func @transform_0(%arg0: i32) -> (i32, i32) {
    %c0_i32 = arith.constant 0 : i32
    %c0_i32_0 = arith.constant 0 : i32
    return %c0_i32, %arg0 : i32, i32
  }
  func.func @transform_1(%arg0: i32) -> (i32, i32) {
    %c0_i32 = arith.constant 0 : i32
    %c0_i32_0 = arith.constant 0 : i32
    %c0_i32_1 = arith.constant 0 : i32
    return %c0_i32, %c0_i32_0 : i32, i32
  }
  func.func @transform_2(%arg0: i32) -> (i32, i32) {
    %c0_i32 = arith.constant 0 : i32
    %c0_i32_0 = arith.constant 0 : i32
    %c0_i32_1 = arith.constant 0 : i32
    return %c0_i32, %c0_i32_0 : i32, i32
  }
  func.func @transform_3(%arg0: i32) -> (i32, i32) {
    %c0_i32 = arith.constant 0 : i32
    %c0_i32_0 = arith.constant 0 : i32
    %c0_i32_1 = arith.constant 0 : i32
    return %c0_i32, %c0_i32_0 : i32, i32
  }
  func.func @transform_4(%arg0: i32) -> (i32, i32) {
    %c0_i32 = arith.constant 0 : i32
    %c0_i32_0 = arith.constant 0 : i32
    %c0_i32_1 = arith.constant 0 : i32
    return %c0_i32, %c0_i32_0 : i32, i32
  }
  func.func @transform_5(%arg0: i32) -> (i32, i32) {
    %c0_i32 = arith.constant 0 : i32
    %c0_i32_0 = arith.constant 0 : i32
    return %c0_i32, %arg0 : i32, i32
  }
}

</mosaic_0001>

<bundles_post_ra>
// kernel: tpu_custom_call.1
= control target key start
LH: loop header
LB: loop body
LE: loop exit
PB: predicated region body
PF: predicated region fallthrough
CT: control target
= control target key end

     0   :  { %10 = vsyncpa [#allocation3], 0  ;;  %s1797_s0 = inlined_call_operand.hbm [shape: f32[8,512], index: 0, kind: input, shape index: {}]   ;;  %s1798_s1 = inlined_call_operand.vmem [shape: f32[16,8], index: 1, kind: input, shape index: {}]   ;;  %s1799_s2 = inlined_call_operand.vmem [shape: f32[16,16], index: 2, kind: input, shape index: {}]   ;;  %s1800_s3 = inlined_call_operand.hbm [shape: f32[16,12], index: 3, kind: input, shape index: {}]   ;;  %s1801_s4 = inlined_call_operand.hbm [shape: f32[9,256], index: 4, kind: input, shape index: {}]   ;;  %s1802_s5 = inlined_call_operand.hbm [shape: f32[16,512], index: 5, kind: output, shape index: {}]  }
   0x1   :  { %12 = vsyncpa [#allocation3 + $0x1], 0 }
   0x2   :  { %13 = vsyncpa [#allocation6], 0 }
   0x3   :  { %14 = vsyncpa [#allocation4], 0 }
   0x4   :  { %16 = vsyncpa [#allocation4 + $0x1], 0  ;;  %s1248_s18 = smov 0   ;;  %s1250_s19 = smov 0  }
   0x5   :  { %s1252_s20 = smov 0   ;;  %s1254_s21 = smov 0  }
   0x6 LB: > { %s1269_s22 = sadd.s32 4294967295, %s1186_s21   ;;  %s898_s23 = sadd.s32 4294967294, %s1186_s21   ;;  %s1186_s21 = sphi %s1254_s21, %s1827_s21   ;;  %s1182_s20 = sphi %s1252_s20, %s1826_s20   ;;  %s1178_s19 = sphi %s1250_s19, %s1825_s19   ;;  %s1174_s18 = sphi %s1248_s18, %s1824_s18  }
   0x7   : > { %p42_p0 = scmp.ne.s32.totalorder %s1178_s19, %s1174_s18  ;;  %p1803_p1 = scmp.eq.s32.totalorder %s1269_s22, 0 }
   0x8   : > { %p156_p3 = scmp.eq.s32.totalorder %s898_s23, 1  ;;  %p899_p5 = scmp.ge.s32.totalorder %s1186_s21, 1 }
   0x9   : > { %p1278_p4 = por %p1803_p1, %p42_p0  ;;  %p163_p7 = scmp.lt.s32.totalorder %s1186_s21, 3 }
   0xa   : > { %p1283_p6 = por %p156_p3, %p42_p0  ;;  %s1188_s27 = smov [#allocation5]  }
   0xb   : > { %s1808_s24 = scalar_select %p1278_p4, 1, 0 }
   0xc   : > { %s1809_s25 = scalar_select %p1283_p6, 1, 0 }
   0xd   : > { %p1288_p8 = pnand %p899_p5, %p163_p7  ;;  %s181_s28 = sshll.u32 %s1188_s27, 4  ;;  %s182_s28 = int_to_ptr.vmem [resolvable:$true] %s181_s28 }
   0xe   : > { %s1189_s30 = smov [#allocation7]   ;;  %s1049_s7 = scalar_lea.vmem %s182_s28, 256 }
   0xf   : > { %s1810_s26 = scalar_select %p1288_p8, 1, 0 }
  0x10   : > { %p935_p9 = pneg %p1288_p8  ;;  %s194_s6 = sshll.u32 %s1189_s30, 4  ;;  %s195_s6 = int_to_ptr.vmem [resolvable:$true] %s194_s6 }
  0x11   : > { %p1050_p13 = scmp.ne.s32.totalorder %s182_s28, %s1049_s7  ;;  %p1057_p5 = scmp.lt.s32.totalorder %s182_s28, %s182_s28 }
  0x12   : > { %p1297_p11 = pnand %p935_p9, %p1803_p1  ;;  %p1058_p7 = scmp.lt.s32.totalorder %s1049_s7, %s1049_s7 }
  0x14   : > { %p1040_p12 = pneg %p1297_p11  ;;  %p1059_p10 = por %p1058_p7, %p1057_p5 }
  0x16   : > { %p1052_p0 = pnand %p1050_p13, %p1040_p12 }
  0x18   : > { %p1053_p3 = pneg %p1052_p0 }
  0x1a   : > { %p1060_p9 = pnand %p1059_p10, %p1053_p3 }
  0x1c   : > { %1063 = shalt.err (!%p1060_p9)
}
  0x1d   : > { %s1190_s8 = smov 128   ;;  %s1191_s9 = smov 8  }
  0x1e   : > { %938 = dma.hbm_to_vmem [thread:$0]  (!%p1297_p11), %s1800_s3, 256, %s182_s28, [#allocation6], %s1190_s8, %s1190_s8, %s1191_s9  }
  0x1f   : > { %s1075_s12 = scalar_lea.vmem %s195_s6, 512  ;;  %p1083_p2 = scmp.lt.s32.totalorder %s195_s6, %s195_s6 }
  0x20   : > { %p1076_p1 = scmp.ne.s32.totalorder %s195_s6, %s1075_s12  ;;  %p1084_p6 = scmp.lt.s32.totalorder %s1075_s12, %s1075_s12 }
  0x22   : > { %p1078_p13 = pnand %p1076_p1, %p1040_p12  ;;  %p1085_p5 = por %p1084_p6, %p1083_p2 }
  0x24   : > { %p1079_p0 = pneg %p1078_p13 }
  0x26   : > { %p1086_p10 = pnand %p1085_p5, %p1079_p0 }
  0x28   : > { %1089 = shalt.err (!%p1086_p10)
}
  0x29   : > { %s1192_s13 = smov 256   ;;  %s1193_s14 = smov 16  }
  0x2a   : > { %941 = dma.hbm_to_vmem [thread:$0]  (!%p1297_p11), %s1801_s4, 512, %s195_s6, [#allocation6], %s1192_s13, %s1192_s13, %s1193_s14  }
  0x2b   : > { %s1320_s17 = sadd.s32 1, %s1186_s21   ;;  %s29_s27 = sadd.s32 1, %s1182_s20 }
  0x2c   : > { %s26_s23 = ssub.s32 %s1186_s21, %s1320_s17  ;;  %p36_p2 = scmp.ne.s32.totalorder %s1182_s20, %s1178_s19 }
  0x2d   : > { %p27_p1 = scmp.eq.s32.totalorder %s26_s23, 0  ;;  %p37_p6 = scmp.eq.s32.totalorder %s1186_s21, 0 }
  0x2e   : > { %p1812_p3 = scmp.eq.s32.totalorder %s1269_s22, 1  ;;  %p952_p9 = scmp.lt.s32.totalorder %s1186_s21, 2 }
  0x2f   : > { %s1329_s28 = scalar_select %p27_p1, %s1182_s20, %s29_s27  }
  0x30   : > { %p38_p12 = por %p37_p6, %p36_p2  ;;  %p1333_p7 = por %p1812_p3, %p36_p2 }
  0x31   : > { %s208_s29 = sand.u32 1, %s1182_s20   ;;  %s921_s6 = sshll.u32 %s1186_s21, 8 }
  0x32   : > { %s1813_s30 = scalar_select %p1333_p7, 1, 0 }
  0x33   : > { %s903_s7 = sshll.u32 %s208_s29, 4  ;;  %s1343_s10 = scalar_lea.hbm %s1797_s0, %s921_s6 }
  0x34   : > { %s212_s11 = scalar_lea.vmem [#allocation2], %s903_s7  ;;  %p1345_p11 = pnand %p952_p9, %p38_p12 }
  0x35   : > { %s220_s12 = sshll.u32 %s212_s11, 4  ;;  %s209_s14 = scalar_lea.sflag [#allocation3], %s208_s29  ;;  %s221_s12 = int_to_ptr.vmem [resolvable:$true] %s220_s12 }
  0x36   : > { %s1090_s15 = scalar_lea.hbm %s1343_s10, 256  ;;  %p1092_p0 = pneg %p1345_p11 }
  0x37   : > { %p1091_p13 = scmp.ne.s32.totalorder %s1343_s10, %s1090_s15  ;;  %s1095_s27 = scalar_lea.hbm %s1797_s0, 512 }
  0x38   : > { %p1096_p1 = scmp.lt.s32.totalorder %s1343_s10, %s1797_s0  ;;  %p1097_p2 = scmp.lt.s32.totalorder %s1095_s27, %s1090_s15 }
  0x39   : > { %p1093_p5 = pnand %p1092_p0, %p1091_p13 }
  0x3a   : > { %p1098_p6 = por %p1097_p2, %p1096_p1 }
  0x3b   : > { %p1094_p10 = pneg %p1093_p5 }
  0x3d   : > { %p1099_p12 = pnand %p1098_p6, %p1094_p10 }
  0x3f   : > { %1102 = shalt.err (!%p1099_p12)
}
  0x40   : > { %s1103_s8 = scalar_lea.vmem %s221_s12, 256  ;;  %s1194_s29 = smov [#allocation2]  }
  0x41   : > { %p1104_p3 = scmp.ne.s32.totalorder %s221_s12, %s1103_s8  ;;  %s1108_s9 = sshll.u32 %s1194_s29, 4  ;;  %s1109_s9 = int_to_ptr.vmem [resolvable:$false] %s1108_s9 }
  0x42   : > { %s1110_s11 = scalar_lea.vmem %s1109_s9, 512  ;;  %p1111_p13 = scmp.lt.s32.totalorder %s221_s12, %s1109_s9 }
  0x43   : > { %p1106_p9 = pnand %p1104_p3, %p1092_p0  ;;  %p1112_p5 = scmp.lt.s32.totalorder %s1110_s11, %s1103_s8 }
  0x45   : > { %p1107_p7 = pneg %p1106_p9  ;;  %p1113_p4 = por %p1112_p5, %p1111_p13 }
  0x47   : > { %p1114_p8 = pnand %p1113_p4, %p1107_p7 }
  0x49   : > { %1117 = shalt.err (!%p1114_p8)
}
  0x4a   : > { %945 = dma.hbm_to_vmem [thread:$0]  (!%p1345_p11), %s1343_s10, 256, %s221_s12, %s209_s14  }
  0x4b   : > { %p1815_p10 = scmp.ne.s32.totalorder %s1810_s26, 0 }
  0x4d   : > { %229 = sbr.rel (%p1815_p10) target bundleno = 723 (0x2d3), region = 40 }
  0x52   : > { %s1366_s15 = sand.u32 1, %s1178_s19   ;;  %p1816_p0 = scmp.ne.s32.totalorder %s1808_s24, 0 }
  0x53   : > { %s907_s16 = sshll.u32 %s1366_s15, 4  ;;  %s232_s23 = scalar_lea.sflag [#allocation3], %s1366_s15 }
  0x54   : > { %s235_s27 = scalar_lea.vmem [#allocation2], %s907_s16 }
  0x55   : > { %1161 = dma.done.wait (%p1816_p0), %s232_s23, 256  }
  0x56   : > { %1163 = vsyncadd (%p1816_p0), %s232_s23, 4294967040  ;;  %p1817_p4 = scmp.eq.s32.totalorder %s1269_s22, 0 }
  0x58   : > { %1165 = dma.done.wait (%p1817_p4), [#allocation6], 768   ;;  %p1818_p8 = pmov %p1817_p4 }
  0x59   : > { %v1195_v0 = vmov 0   ;;  %v1196_v1 = vmov 9   ;;  %v1197_v2 = vmov 4   ;;  %v274_v3 = vld [vmem:[%s235_s27 + $0x8] sm:$0xff]  ;;  %vm300_vm0 = vcmask 1043456   ;;  %v273_v4 = vld [vmem:[%s235_s27] sm:$0xff] }
  0x5a   : > { %1167 = vsyncadd (%p1818_p8), [#allocation6], 4294966528  ;;  %339 = vmatprep.mubr.bf16.mxu0 %v1195_v0  ;;  %1016 = vset.pattern.permute.xlu0 %v1196_v1  ;;  %v281_v5 = vld [vmem:[%s1798_s1] sm:$0xff]  ;;  %v285_v6 = vpack.c.bf16 %v274_v3, %v274_v3  ;;  %v284_v7 = vpack.c.bf16 %v273_v4, %v273_v4  ;;  %v282_v8 = vld [vmem:[%s1798_s1 + $0x8] sm:$0xff]  ;;  %vm296_vm1 = vcmask 64512   ;;  %v1198_v13 = vmov 10  }
  0x5b   : > { %1017 = vset.pattern.permute.xlu1 %v1197_v2  ;;  %769 = vmatprep.mubr.bf16.mxu1 %v1195_v0  ;;  %v1384_v9 = vld [vmem:[#allocation5] sm:$0xff]  ;;  %v283_v11 = vpack.c.bf16 %v282_v8, %v281_v5  ;;  %v1388_v12 = vld [vmem:[#allocation5 + $0x8] sm:$0xff]  ;;  %v1199_v14 = vmov 1   ;;  %v1200_v15 = vmov 2   ;;  %v1201_v16 = vmov 3   ;;  %s1206_s13 = smov 17  }
  0x5c   : > { %288 = vperm.xlu0 %1016, %v1384_v9   ;;  %359 = vperm.xlu1 %1017, %v1384_v9   ;;  %v302_v10 = vsel %vm300_vm0, %v284_v7, 0  ;;  %v1202_v17 = vmov 5   ;;  %v1203_v18 = vmov 6   ;;  %v1204_v19 = vmov 7   ;;  %s1207_s14 = smov 16   ;;  %s1208_s6 = smov 15  }
  0x5d   : > { %911 = vmatprep.subr.msk.bf16.mxu0 %vm300_vm0, %v285_v6  ;;  %v1205_v20 = vmov 8   ;;  %s1209_s7 = smov 127   ;;  %s1210_s8 = smov 1   ;;  %v1214_v53 = vmov 11   ;;  %v390_v6 = vlaneseq  ;;  %vm733_vm10 = vcmask 130048  }
  0x5e   : > { %322 = vmatpush1.bf16.msra.mxu0 %v302_v10  ;;  %s1211_s29 = smov 112   ;;  %s1212_s9 = smov 113  }
  0x5f   : > { %s1213_s11 = smov 111   ;;  %v1504_v8 = vshrl.u32 %v390_v6, 7  ;;  %s910_s10 = sshll.u32 %s1366_s15, 5 }
  0x60   : > { %293 = vperm.xlu0 %1016, %v1388_v12   ;;  %363 = vperm.xlu1 %1017, %v1388_v12   ;;  %s269_s24 = scalar_lea.vmem [#allocation8], %s910_s10  ;;  %p1821_p11 = scmp.ne.s32.totalorder %s1813_s30, 0 }
  0x61   : > { %912 = vmatmul.mubr.msk.bf16.vlgmr.msra.gmra.mxu0 %vm296_vm1, %v283_v11  ;;  %v1508_v11 = vand.u32 127, %v390_v6  ;;  %s806_s12 = sshll.u32 %s269_s24, 4  ;;  %s1748_s12 = int_to_ptr.vmem [resolvable:$true] %s806_s12 }
  0x63   : > { %vm392_vm2 = vcmp.lt.s32.totalorder %v1508_v11, 17  ;;  %vm433_vm3 = vcmp.lt.s32.totalorder %v1508_v11, 16  ;;  %vm474_vm4 = vcmp.lt.s32.totalorder %v1508_v11, 15  ;;  %vm556_vm5 = vcmp.lt.s32.totalorder %v1508_v11, 127 }
  0x64   : > { %1018 = vset.pattern.permute.xlu0 %v1198_v13  ;;  %1019 = vset.pattern.permute.xlu1 %v1198_v13  ;;  %vm638_vm6 = vcmp.lt.s32.totalorder %v1508_v11, 112  ;;  %vm515_vm7 = vcmp.lt.s32.totalorder %v1508_v11, 1  ;;  %vm597_vm8 = vcmp.lt.s32.totalorder %v1508_v11, 113  ;;  %vm679_vm9 = vcmp.lt.s32.totalorder %v1508_v11, 111 }
  0x65   : > { %371 = vperm.xlu0 %1018, %v1384_v9   ;;  %375 = vperm.xlu1 %1019, %v1388_v12  }
  0x69   : > { %1020 = vset.pattern.permute.xlu1 %v1195_v0  ;;  %1021 = vset.pattern.permute.xlu0 %v1195_v0 }
  0x6a   : > { %410 = vperm.xlu1 %1020, %v1384_v9   ;;  %414 = vperm.xlu0 %1021, %v1388_v12  }
  0x6e   : > { %1023 = vset.pattern.permute.xlu1 %v1199_v14  ;;  %1022 = vset.pattern.permute.xlu0 %v1199_v14  ;;  %v1513_v14 = vld [vmem:[#allocation7] sm:$0xff] }
  0x6f   : > { %455 = vperm.xlu1 %1023, %v1388_v12   ;;  %451 = vperm.xlu0 %1022, %v1384_v9  }
  0x73   : > { %1024 = vset.pattern.permute.xlu1 %v1200_v15  ;;  %1025 = vset.pattern.permute.xlu0 %v1200_v15 }
  0x74   : > { %492 = vperm.xlu1 %1024, %v1384_v9   ;;  %496 = vperm.xlu0 %1025, %v1388_v12  }
  0x78   : > { %1027 = vset.pattern.permute.xlu1 %v1201_v16  ;;  %1026 = vset.pattern.permute.xlu0 %v1201_v16 }
  0x79   : > { %537 = vperm.xlu1 %1027, %v1388_v12   ;;  %533 = vperm.xlu0 %1026, %v1384_v9  }
  0x7d   : > { %1028 = vset.pattern.permute.xlu1 %v1202_v17  ;;  %1029 = vset.pattern.permute.xlu0 %v1202_v17 }
  0x7e   : > { %574 = vperm.xlu1 %1028, %v1384_v9   ;;  %578 = vperm.xlu0 %1029, %v1388_v12  }
  0x82   : > { %1031 = vset.pattern.permute.xlu1 %v1203_v18  ;;  %1030 = vset.pattern.permute.xlu0 %v1203_v18 }
  0x83   : > { %619 = vperm.xlu1 %1031, %v1388_v12   ;;  %615 = vperm.xlu0 %1030, %v1384_v9  }
  0x87   : > { %1032 = vset.pattern.permute.xlu1 %v1204_v19  ;;  %1033 = vset.pattern.permute.xlu0 %v1204_v19  ;;  %v440_v19 = vsub.s32 1, %v1504_v8 }
  0x88   : > { %656 = vperm.xlu1 %1032, %v1384_v9   ;;  %660 = vperm.xlu0 %1033, %v1388_v12  }
  0x8c   : > { %1035 = vset.pattern.permute.xlu1 %v1205_v20  ;;  %1034 = vset.pattern.permute.xlu0 %v1205_v20 }
  0x8d   : > { %701 = vperm.xlu1 %1035, %v1388_v12   ;;  %697 = vperm.xlu0 %1034, %v1384_v9  }
  0x91   : > { %1036 = vset.pattern.permute.xlu1 %v1214_v53  ;;  %1037 = vset.pattern.permute.xlu0 %v1214_v53  ;;  %v563_v53 = vsub.s32 5, %v1504_v8 }
  0xd7   : > { %v289_v21 = vpop.permute.xlu0 %288  ;;  %v1410_v22 = vpop.permute.xlu1 %359 }
  0xdb   : > { %v294_v25 = vpop.permute.xlu0 %293  ;;  %v1412_v30 = vpop.permute.xlu1 %363 }
  0xe0   : > { %v1414_v34 = vpop.permute.xlu0 %371  ;;  %v1425_v40 = vpop.permute.xlu1 %375 }
  0xe5   : > { %v1461_v47 = vpop.permute.xlu1 %410  ;;  %v1465_v48 = vpop.permute.xlu0 %414 }
  0xea   : > { %v1469_v49 = vpop.permute.xlu1 %455  ;;  %v1471_v50 = vpop.permute.xlu0 %451 }
  0xef   : > { %v1474_v51 = vpop.permute.xlu1 %492  ;;  %v1476_v52 = vpop.permute.xlu0 %496 }
  0xf4   : > { %v1480_v54 = vpop.permute.xlu1 %537  ;;  %v1482_v55 = vpop.permute.xlu0 %533 }
  0xf9   : > { %v1484_v56 = vpop.permute.xlu1 %574  ;;  %v1486_v57 = vpop.permute.xlu0 %578 }
  0xfe   : > { %v1488_v58 = vpop.permute.xlu1 %619  ;;  %v1490_v59 = vpop.permute.xlu0 %615 }
 0x103   : > { %v1492_v60 = vpop.permute.xlu1 %656  ;;  %v1494_v61 = vpop.permute.xlu0 %660 }
 0x108   : > { %v1496_v62 = vpop.permute.xlu1 %701  ;;  %v1498_v63 = vpop.permute.xlu0 %697 }
 0x109   : > { %1819 = vst [vmem:[#allocation12_spill] sm:$0xff] %v1498_v63 }
 0x121   : > { %v341_v23 = vpop.f32.mrf.mxu0 }
 0x122   : > { %v342_v24 = vadd.f32 %v341_v23, %v289_v21 }
 0x123   : > { %v343_v26 = vpop.f32.mrf.mxu0 }
 0x124   : > { %v350_v27 = vmax.f32 %v342_v24, 0.0  ;;  %v344_v28 = vadd.f32 %v343_v26, %v289_v21  ;;  %v1533_v24 = vrot.slane %v1513_v14, %v440_v19 }
 0x125   : > { %v345_v29 = vpop.f32.mrf.mxu0 }
 0x126   : > { %v354_v31 = vmin.f32 %v350_v27, 6.0  ;;  %v351_v32 = vmax.f32 %v344_v28, 0.0  ;;  %v346_v33 = vadd.f32 %v345_v29, %v294_v25 }
 0x127   : > { %v347_v43 = vpop.f32.mrf.mxu0 }
 0x128   : > { %v1416_v35 = vmin.f32 %v351_v32, 6.0  ;;  %v366_v36 = vmul.f32 %v1410_v22, %v354_v31  ;;  %v352_v37 = vmax.f32 %v346_v33, 0.0  ;;  %382 = vrot.lane.b32.xlu1 %v354_v31, %s1206_s13  ;;  %v348_v44 = vadd.f32 %v347_v43, %v294_v25 }
 0x12a   : > { %v356_v38 = vmin.f32 %v352_v37, 6.0  ;;  %v1421_v39 = vadd.f32 %v1414_v34, %v366_v36  ;;  %386 = vrot.lane.b32.xlu0 %v1416_v35, %s1206_s13  ;;  %v353_v45 = vmax.f32 %v348_v44, 0.0  ;;  %v278_v36 = vld [vmem:[#allocation7 + $0x8] sm:$0xff] }
 0x12c   : > { %v368_v41 = vmul.f32 %v1412_v30, %v356_v38  ;;  %425 = vrot.lane.b32.xlu1 %v354_v31, %s1207_s14  ;;  %v1442_v46 = vmin.f32 %v353_v45, 6.0  ;;  %v481_v45 = vsub.s32 2, %v1504_v8 }
 0x12e   : > { %v1430_v42 = vadd.f32 %v1425_v40, %v368_v41  ;;  %470 = vrot.lane.b32.xlu0 %v1416_v35, %s1208_s6 }
 0x130   : > { %466 = vrot.lane.b32.xlu1 %v354_v31, %s1208_s6 }
 0x132   : > { %552 = vrot.lane.b32.xlu0 %v1416_v35, %s1209_s7 }
 0x134   : > { %507 = vrot.lane.b32.xlu1 %v354_v31, %s1210_s8 }
 0x136   : > { %634 = vrot.lane.b32.xlu0 %v1416_v35, %s1211_s29 }
 0x138   : > { %548 = vrot.lane.b32.xlu1 %v354_v31, %s1209_s7 }
 0x13a   : > { %427 = vrot.lane.b32.xlu0 %v356_v38, %s1207_s14 }
 0x13c   : > { %589 = vrot.lane.b32.xlu1 %v354_v31, %s1212_s9 }
 0x13e   : > { %509 = vrot.lane.b32.xlu0 %v356_v38, %s1210_s8 }
 0x140   : > { %630 = vrot.lane.b32.xlu1 %v354_v31, %s1211_s29 }
 0x142   : > { %591 = vrot.lane.b32.xlu0 %v356_v38, %s1212_s9 }
 0x144   : > { %671 = vrot.lane.b32.xlu1 %v354_v31, %s1213_s11 }
 0x146   : > { %673 = vrot.lane.b32.xlu0 %v356_v38, %s1213_s11 }
 0x148   : > { %429 = vrot.lane.b32.xlu1 %v1416_v35, %s1207_s14 }
 0x14a   : > { %431 = vrot.lane.b32.xlu0 %v1442_v46, %s1207_s14 }
 0x14c   : > { %511 = vrot.lane.b32.xlu1 %v1416_v35, %s1210_s8 }
 0x14e   : > { %513 = vrot.lane.b32.xlu0 %v1442_v46, %s1210_s8 }
 0x150   : > { %593 = vrot.lane.b32.xlu1 %v1416_v35, %s1212_s9 }
 0x152   : > { %595 = vrot.lane.b32.xlu0 %v1442_v46, %s1212_s9  ;;  %s1118_s9 = scalar_lea.vmem %s1748_s12, 512 }
 0x153   : > { %p1119_p7 = scmp.ne.s32.totalorder %s1748_s12, %s1118_s9 }
 0x154   : > { %384 = vrot.lane.b32.xlu1 %v356_v38, %s1206_s13 }
 0x155   : > { %p1120_p1 = pnand %p1119_p7, %p1821_p11 }
 0x156   : > { %677 = vrot.lane.b32.xlu0 %v1442_v46, %s1213_s11 }
 0x157   : > { %p1121_p2 = pneg %p1120_p1 }
 0x158   : > { %468 = vrot.lane.b32.xlu1 %v356_v38, %s1208_s6 }
 0x15a   : > { %730 = vperm.xlu0 %1037, %v1388_v12   ;;  %v399_v12 = vsub.s32 0, %v1504_v8 }
 0x15c   : > { %550 = vrot.lane.b32.xlu1 %v356_v38, %s1209_s7  ;;  %v1519_v16 = vrot.slane %v1513_v14, %v399_v12  ;;  %v1547_v41 = vrot.slane %v278_v36, %v399_v12 }
 0x160   : > { %632 = vrot.lane.b32.xlu1 %v356_v38, %s1211_s29 }
 0x164   : > { %388 = vrot.lane.b32.xlu1 %v1442_v46, %s1206_s13  ;;  %s922_s13 = sshll.u32 %s1269_s22, 8  ;;  %s1215_s22 = smov [#allocation8]  }
 0x165   : > { %s1753_s8 = scalar_lea.hbm %s1802_s5, %s922_s13 }
 0x168   : > { %472 = vrot.lane.b32.xlu1 %v1442_v46, %s1208_s6 }
 0x16c   : > { %554 = vrot.lane.b32.xlu1 %v1442_v46, %s1209_s7 }
 0x170   : > { %636 = vrot.lane.b32.xlu1 %v1442_v46, %s1211_s29  ;;  %s793_s29 = scalar_lea.sflag [#allocation4], %s1366_s15 }
 0x174   : > { %675 = vrot.lane.b32.xlu1 %v1416_v35, %s1213_s11  ;;  %s1122_s11 = sshll.u32 %s1215_s22, 4  ;;  %s1123_s11 = int_to_ptr.vmem [resolvable:$false] %s1122_s11 }
 0x175   : > { %s1124_s16 = scalar_lea.vmem %s1123_s11, 1024  ;;  %p1125_p6 = scmp.lt.s32.totalorder %s1748_s12, %s1123_s11 }
 0x176   : > { %p1126_p12 = scmp.lt.s32.totalorder %s1124_s16, %s1118_s9 }
 0x178   : > { %726 = vperm.xlu1 %1036, %v1384_v9   ;;  %p1127_p3 = por %p1126_p12, %p1125_p6 }
 0x17a   : > { %p1128_p9 = pnand %p1127_p3, %p1121_p2 }
 0x19a   : > { %v383_v0 = vpop.permute.xlu1 %382 }
 0x19c   : > { %v387_v1 = vpop.permute.xlu0 %386 }
 0x19d   : > { %v395_v18 = vsel %vm392_vm2, %v387_v1, %v383_v0  ;;  %v393_v44 = vsel %vm392_vm2, %v383_v0, %v387_v1  ;;  %v645_v0 = vsub.s32 7, %v1504_v8  ;;  %v1567_v1 = vrot.slane %v1513_v14, %v481_v45 }
 0x19e   : > { %v426_v2 = vpop.permute.xlu1 %425  ;;  %v405_v20 = vmul.f32 %v1519_v16, %v395_v18  ;;  %v367_v18 = vmul.f32 %v1410_v22, %v1416_v35  ;;  %v406_v12 = vmul.f32 %v1547_v41, %v393_v44  ;;  %v1573_v35 = vrot.slane %v1513_v14, %v563_v53 }
 0x1a0   : > { %v471_v3 = vpop.permute.xlu0 %470  ;;  %v417_v25 = vmul.f32 %v1461_v47, %v405_v20  ;;  %v369_v20 = vmul.f32 %v1412_v30, %v1442_v46  ;;  %v1575_v30 = vrot.slane %v278_v36, %v563_v53  ;;  %v1592_v53 = vrot.slane %v1513_v14, %v645_v0 }
 0x1a2   : > { %v467_v4 = vpop.permute.xlu1 %466  ;;  %v421_v31 = vadd.f32 %v417_v25, %v1421_v39  ;;  %v445_v39 = vrot.slane %v278_v36, %v440_v19  ;;  %v1569_v19 = vrot.slane %v278_v36, %v481_v45 }
 0x1a3   : > { %v475_v44 = vsel %vm474_vm4, %v467_v4, %v471_v3  ;;  %v477_v45 = vsel %vm474_vm4, %v471_v3, %v467_v4 }
 0x1a4   : > { %v1500_v5 = vpop.permute.xlu0 %552 }
 0x1a6   : > { %v1502_v7 = vpop.permute.xlu1 %507 }
 0x1a8   : > { %v1506_v10 = vpop.permute.xlu0 %634 }
 0x1aa   : > { %v549_v9 = vpop.permute.xlu1 %548 }
 0x1ac   : > { %v1516_v15 = vpop.permute.xlu0 %427 }
 0x1ae   : > { %v1511_v13 = vpop.permute.xlu1 %589 }
 0x1b0   : > { %v1529_v23 = vpop.permute.xlu0 %509 }
 0x1b2   : > { %v1521_v17 = vpop.permute.xlu1 %630 }
 0x1b4   : > { %v1539_v29 = vpop.permute.xlu0 %591 }
 0x1b6   : > { %v1527_v21 = vpop.permute.xlu1 %671 }
 0x1b8   : > { %v1549_v43 = vpop.permute.xlu0 %673 }
 0x1ba   : > { %v430_v26 = vpop.permute.xlu1 %429 }
 0x1bb   : > { %v436_v27 = vsel %vm433_vm3, %v430_v26, %v426_v2  ;;  %v434_v25 = vsel %vm433_vm3, %v426_v2, %v430_v26  ;;  %v522_v2 = vsub.s32 3, %v1504_v8 }
 0x1bc   : > { %v446_v28 = vmul.f32 %v1533_v24, %v436_v27  ;;  %v432_v22 = vpop.permute.xlu0 %431  ;;  %v447_v46 = vmul.f32 %v445_v39, %v434_v25  ;;  %v379_v27 = vadd.f32 %v1414_v34, %v367_v18  ;;  %v557_v34 = vsel %vm556_vm5, %v549_v9, %v1500_v5 }
 0x1bd   : > { %v523_v3 = vrot.slane %v1513_v14, %v522_v2  ;;  %v527_v4 = vrot.slane %v278_v36, %v522_v2  ;;  %v488_v25 = vmul.f32 %v1569_v19, %v475_v44  ;;  %v639_v2 = vsel %vm638_vm6, %v1521_v17, %v1506_v10 }
 0x1be   : > { %v458_v32 = vmul.f32 %v1471_v50, %v446_v28  ;;  %v512_v33 = vpop.permute.xlu1 %511  ;;  %v1582_v28 = vadd.f32 %v1425_v40, %v369_v20  ;;  %v559_v40 = vsel %vm556_vm5, %v1500_v5, %v549_v9  ;;  %v569_v9 = vmul.f32 %v1573_v35, %v557_v34 }
 0x1bf   : > { %v641_v44 = vsel %vm638_vm6, %v1506_v10, %v1521_v17 }
 0x1c0   : > { %v1543_v37 = vadd.f32 %v458_v32, %v421_v31  ;;  %v418_v31 = vmul.f32 %v1461_v47, %v406_v12  ;;  %v604_v32 = vsub.s32 6, %v1504_v8  ;;  %v1600_v47 = vrot.slane %v278_v36, %v645_v0  ;;  %v514_v63 = vpop.permute.xlu0 %513 }
 0x1c1   : > { %v459_v8 = vmul.f32 %v1471_v50, %v447_v46  ;;  %v487_v12 = vmul.f32 %v1567_v1, %v477_v45  ;;  %v570_v0 = vmul.f32 %v1575_v30, %v559_v40  ;;  %v516_v50 = vsel %vm515_vm7, %v1502_v7, %v512_v33 }
 0x1c2   : > { %v1545_v38 = vpop.permute.xlu1 %593  ;;  %v422_v20 = vadd.f32 %v418_v31, %v379_v27  ;;  %v605_v5 = vrot.slane %v1513_v14, %v604_v32  ;;  %v518_v46 = vsel %vm515_vm7, %v512_v33, %v1502_v7  ;;  %v435_v14 = vsel %vm433_vm3, %v1516_v15, %v432_v22 }
 0x1c3   : > { %v437_v27 = vsel %vm433_vm3, %v432_v22, %v1516_v15  ;;  %v609_v31 = vrot.slane %v278_v36, %v604_v32  ;;  %v517_v33 = vsel %vm515_vm7, %v1529_v23, %v514_v63  ;;  %v519_v45 = vsel %vm515_vm7, %v514_v63, %v1529_v23 }
 0x1c4   : > { %v463_v7 = vadd.f32 %v459_v8, %v422_v20  ;;  %v499_v40 = vmul.f32 %v1474_v51, %v487_v12  ;;  %v500_v15 = vmul.f32 %v1474_v51, %v488_v25  ;;  %v528_v36 = vmul.f32 %v523_v3, %v518_v46 }
 0x1c5   : > { %v529_v22 = vmul.f32 %v527_v4, %v516_v50  ;;  %v581_v32 = vmul.f32 %v1484_v56, %v569_v9  ;;  %v582_v10 = vmul.f32 %v1484_v56, %v570_v0  ;;  %v448_v17 = vmul.f32 %v1533_v24, %v437_v27 }
 0x1c6   : > { %v1555_v6 = vpop.permute.xlu1 %384  ;;  %v449_v8 = vmul.f32 %v445_v39, %v435_v14  ;;  %v1648_v20 = vmul.f32 %v1592_v53, %v639_v2  ;;  %v1651_v63 = vmul.f32 %v1600_v47, %v641_v44  ;;  %v530_v23 = vmul.f32 %v523_v3, %v519_v45  ;;  %v596_v39 = vpop.permute.xlu0 %595 }
 0x1c7   : > { %v531_v12 = vmul.f32 %v527_v4, %v517_v33  ;;  %v504_v51 = vadd.f32 %v500_v15, %v463_v7  ;;  %v503_v25 = vadd.f32 %v499_v40, %v1543_v37  ;;  %v598_v56 = vsel %vm597_vm8, %v1511_v13, %v1545_v38 }
 0x1c8   : > { %v600_v24 = vsel %vm597_vm8, %v1545_v38, %v1511_v13  ;;  %v540_v0 = vmul.f32 %v1482_v55, %v528_v36  ;;  %v541_v3 = vmul.f32 %v1482_v55, %v529_v22  ;;  %v460_v50 = vmul.f32 %v1469_v49, %v448_v17 }
 0x1c9   : > { %v461_v46 = vmul.f32 %v1469_v49, %v449_v8  ;;  %v542_v2 = vmul.f32 %v1480_v54, %v530_v23  ;;  %v543_v55 = vmul.f32 %v1480_v54, %v531_v12  ;;  %v610_v14 = vmul.f32 %v605_v5, %v598_v56 }
 0x1ca   : > { %v1578_v26 = vpop.permute.xlu1 %468  ;;  %v611_v27 = vmul.f32 %v609_v31, %v600_v24  ;;  %v599_v44 = vsel %vm597_vm8, %v1539_v29, %v596_v39  ;;  %v545_v33 = vadd.f32 %v541_v3, %v504_v51  ;;  %v678_v40 = vpop.permute.xlu0 %677 }
 0x1cb   : > { %v622_v22 = vmul.f32 %v1490_v59, %v610_v14  ;;  %v612_v8 = vmul.f32 %v605_v5, %v599_v44  ;;  %v914_v5 = vld [vmem:[#allocation7 + $0x18] ss:$0 sm:$0xff] }
 0x1cc   : > { %v623_v17 = vmul.f32 %v1490_v59, %v611_v27 }
 0x1ce   : > { %v1606_v18 = vpop.permute.xlu1 %550 }
 0x1d2   : > { %v1639_v34 = vpop.permute.xlu1 %632 }
 0x1d6   : > { %v389_v9 = vpop.permute.xlu1 %388 }
 0x1d7   : > { %v394_v37 = vsel %vm392_vm2, %v1555_v6, %v389_v9  ;;  %v396_v4 = vsel %vm392_vm2, %v389_v9, %v1555_v6  ;;  %v601_v6 = vsel %vm597_vm8, %v596_v39, %v1539_v29  ;;  %v586_v9 = vadd.f32 %v582_v10, %v545_v33 }
 0x1d8   : > { %v407_v13 = vmul.f32 %v1519_v16, %v396_v4  ;;  %v408_v38 = vmul.f32 %v1547_v41, %v394_v37  ;;  %v544_v41 = vadd.f32 %v540_v0, %v503_v25  ;;  %v613_v23 = vmul.f32 %v609_v31, %v601_v6 }
 0x1d9   : > { %v627_v27 = vadd.f32 %v623_v17, %v586_v9 }
 0x1da   : > { %v419_v49 = vmul.f32 %v1465_v48, %v407_v13  ;;  %v420_v16 = vmul.f32 %v1465_v48, %v408_v38  ;;  %v473_v7 = vpop.permute.xlu1 %472  ;;  %v585_v0 = vadd.f32 %v581_v32, %v544_v41  ;;  %v625_v3 = vmul.f32 %v1488_v58, %v613_v23 }
 0x1db   : > { %v476_v54 = vsel %vm474_vm4, %v1578_v26, %v473_v7  ;;  %v478_v45 = vsel %vm474_vm4, %v473_v7, %v1578_v26 }
 0x1dc   : > { %v423_v15 = vadd.f32 %v419_v49, %v1430_v42  ;;  %v424_v29 = vadd.f32 %v420_v16, %v1582_v28  ;;  %v489_v36 = vmul.f32 %v1567_v1, %v478_v45  ;;  %v490_v48 = vmul.f32 %v1569_v19, %v476_v54  ;;  %v913_v28 = vld [vmem:[#allocation7 + $0x10] ss:$0 sm:$0xff]  ;;  %v1820_v45 = vld [vmem:[#allocation12_spill] sm:$0xff] }
 0x1dd   : > { %v681_v42 = vsel %vm679_vm9, %v1549_v43, %v678_v40  ;;  %v683_v1 = vsel %vm679_vm9, %v678_v40, %v1549_v43  ;;  %v624_v43 = vmul.f32 %v1488_v58, %v612_v8  ;;  %v626_v14 = vadd.f32 %v622_v22, %v585_v0 }
 0x1de   : > { %v464_v12 = vadd.f32 %v460_v50, %v423_v15  ;;  %v465_v51 = vadd.f32 %v461_v46, %v424_v29  ;;  %v501_v25 = vmul.f32 %v1476_v52, %v489_v36  ;;  %v502_v26 = vmul.f32 %v1476_v52, %v490_v48  ;;  %v555_v56 = vpop.permute.xlu1 %554 }
 0x1df   : > { %v558_v59 = vsel %vm556_vm5, %v1606_v18, %v555_v56  ;;  %v560_v19 = vsel %vm556_vm5, %v555_v56, %v1606_v18  ;;  %v694_v13 = vmul.f32 %v913_v28, %v681_v42  ;;  %v695_v38 = vmul.f32 %v914_v5, %v683_v1 }
 0x1e0   : > { %v505_v52 = vadd.f32 %v501_v25, %v464_v12  ;;  %v506_v31 = vadd.f32 %v502_v26, %v465_v51  ;;  %v571_v24 = vmul.f32 %v1573_v35, %v558_v59  ;;  %v572_v39 = vmul.f32 %v1575_v30, %v560_v19  ;;  %v720_v25 = vld [vmem:[%s1799_s2] sm:$0xff]  ;;  %v721_v26 = vld [vmem:[%s1799_s2 + $0x8] sm:$0xff] }
 0x1e1   : > { %v706_v7 = vmul.f32 %v1496_v62, %v694_v13  ;;  %v722_v1 = vpack.c.bf16 %v721_v26, %v720_v25 }
 0x1e2   : > { %v546_v37 = vadd.f32 %v542_v2, %v505_v52  ;;  %v547_v4 = vadd.f32 %v543_v55, %v506_v31  ;;  %v583_v50 = vmul.f32 %v1486_v57, %v571_v24  ;;  %v584_v18 = vmul.f32 %v1486_v57, %v572_v39  ;;  %v637_v46 = vpop.permute.xlu1 %636  ;;  %v731_v52 = vpop.permute.xlu0 %730 }
 0x1e3   : > { %v640_v35 = vsel %vm638_vm6, %v1639_v34, %v637_v46  ;;  %v642_v30 = vsel %vm638_vm6, %v637_v46, %v1639_v34  ;;  %v663_v57 = vmul.f32 %v1492_v60, %v1648_v20  ;;  %v664_v55 = vmul.f32 %v1492_v60, %v1651_v63 }
 0x1e4   : > { %v587_v32 = vadd.f32 %v583_v50, %v546_v37  ;;  %v588_v10 = vadd.f32 %v584_v18, %v547_v4  ;;  %v653_v58 = vmul.f32 %v1592_v53, %v640_v35  ;;  %v654_v2 = vmul.f32 %v1600_v47, %v642_v30 }
 0x1e5   : > { %v707_v53 = vmul.f32 %v1496_v62, %v695_v38  ;;  %v667_v54 = vadd.f32 %v663_v57, %v626_v14 }
 0x1e6   : > { %v665_v44 = vmul.f32 %v1494_v61, %v653_v58  ;;  %v666_v6 = vmul.f32 %v1494_v61, %v654_v2  ;;  %v676_v49 = vpop.permute.xlu1 %675  ;;  %v629_v34 = vadd.f32 %v625_v3, %v588_v10  ;;  %v628_v16 = vadd.f32 %v624_v43, %v587_v32 }
 0x1e7   : > { %v680_v47 = vsel %vm679_vm9, %v1527_v21, %v676_v49  ;;  %v682_v60 = vsel %vm679_vm9, %v676_v49, %v1527_v21  ;;  %v668_v61 = vadd.f32 %v664_v55, %v627_v27 }
 0x1e8   : > { %v692_v20 = vmul.f32 %v913_v28, %v680_v47  ;;  %v693_v63 = vmul.f32 %v914_v5, %v682_v60  ;;  %v670_v41 = vadd.f32 %v666_v6, %v629_v34  ;;  %v669_v33 = vadd.f32 %v665_v44, %v628_v16 }
 0x1ea   : > { %v704_v40 = vmul.f32 %v1820_v45, %v692_v20  ;;  %v705_v15 = vmul.f32 %v1820_v45, %v693_v63  ;;  %v711_v29 = vadd.f32 %v707_v53, %v670_v41  ;;  %v710_v62 = vadd.f32 %v706_v7, %v669_v33 }
 0x1ec   : > { %v709_v36 = vadd.f32 %v705_v15, %v668_v61  ;;  %v715_v48 = vmax.f32 %v711_v29, 0.0  ;;  %v708_v22 = vadd.f32 %v704_v40, %v667_v54  ;;  %v714_v17 = vmax.f32 %v710_v62, 0.0 }
 0x1ee   : > { %v713_v8 = vmax.f32 %v709_v36, 0.0  ;;  %v712_v23 = vmax.f32 %v708_v22, 0.0  ;;  %v719_v21 = vmin.f32 %v715_v48, 6.0  ;;  %v718_v51 = vmin.f32 %v714_v17, 6.0 }
 0x1f0   : > { %v717_v11 = vmin.f32 %v713_v8, 6.0  ;;  %v716_v12 = vmin.f32 %v712_v23, 6.0 }
 0x1f2   : > { %v724_v56 = vpack.c.bf16 %v719_v21, %v717_v11  ;;  %v723_v42 = vpack.c.bf16 %v718_v51, %v716_v12 }
 0x1f3   : > { %v727_v59 = vpop.permute.xlu1 %726 }
 0x1f4   : > { %751 = vmatprep.subr.bf16.mxu1 %v724_v56 }
 0x1f5   : > { %752 = vmatpush1.bf16.msra.mxu1 %v723_v42 }
 0x1f8   : > { %915 = vmatmul.mubr.msk.bf16.vlgmr.msra.gmra.mxu1 %vm733_vm10, %v722_v1 }
 0x2b8   : > { %v771_v19 = vpop.f32.mrf.mxu1 }
 0x2b9   : > { %v772_v28 = vadd.f32 %v771_v19, %v727_v59 }
 0x2ba   : > { %v773_v5 = vpop.f32.mrf.mxu1 }
 0x2bb   : > { %v780_v31 = vmax.f32 %v772_v28, 0.0  ;;  %v774_v24 = vadd.f32 %v773_v5, %v727_v59 }
 0x2bc   : > { %v775_v39 = vpop.f32.mrf.mxu1 }
 0x2bd   : > { %v784_v9 = vmin.f32 %v780_v31, 6.0  ;;  %v781_v0 = vmax.f32 %v774_v24, 0.0  ;;  %v776_v43 = vadd.f32 %v775_v39, %v731_v52 }
 0x2be   : > { %v777_v3 = vpop.f32.mrf.mxu1 }
 0x2bf   : > { %788 = vst [vmem:[%s269_s24] sm:$0xff] %v784_v9  ;;  %v785_v37 = vmin.f32 %v781_v0, 6.0  ;;  %v782_v4 = vmax.f32 %v776_v43, 0.0  ;;  %v778_v50 = vadd.f32 %v777_v3, %v731_v52 }
 0x2c1   : > { %789 = vst [vmem:[%s269_s24 + $0x8] sm:$0xff] %v785_v37  ;;  %v786_v18 = vmin.f32 %v782_v4, 6.0  ;;  %v783_v46 = vmax.f32 %v778_v50, 0.0 }
 0x2c3   : > { %790 = vst [vmem:[%s269_s24 + $0x10] sm:$0xff] %v786_v18  ;;  %v787_v13 = vmin.f32 %v783_v46, 6.0 }
 0x2c5   : > { %791 = vst [vmem:[%s269_s24 + $0x18] sm:$0xff] %v787_v13 }
 0x2c6   : > { %1131 = shalt.err (!%p1128_p9)
}
 0x2c7   : > { %s1132_s23 = scalar_lea.hbm %s1753_s8, 512  ;;  %s1136_s10 = scalar_lea.hbm %s1802_s5, 1024 }
 0x2c8   : > { %p1133_p13 = scmp.ne.s32.totalorder %s1753_s8, %s1132_s23  ;;  %p1137_p0 = scmp.lt.s32.totalorder %s1753_s8, %s1802_s5 }
 0x2c9   : > { %p1138_p4 = scmp.lt.s32.totalorder %s1136_s10, %s1132_s23 }
 0x2ca   : > { %p1134_p5 = pnand %p1133_p13, %p1821_p11 }
 0x2cb   : > { %p1139_p8 = por %p1138_p4, %p1137_p0 }
 0x2cc   : > { %p1135_p10 = pneg %p1134_p5 }
 0x2ce   : > { %p1140_p7 = pnand %p1139_p8, %p1135_p10 }
 0x2d0   : > { %1143 = shalt.err (!%p1140_p7)
}
 0x2d1   : > { %s1216_s6 = smov 256   ;;  %s1217_s7 = smov 512  }
 0x2d2   : > { %933 = dma.vmem_to_hbm [thread:$0]  (%p1821_p11), %s1748_s12, 512, %s1753_s8, %s793_s29, %s1216_s6, %s1217_s7, %s1207_s14  }
 0x2d3 PF: > { %s821_s9 = sand.u32 1, %s1174_s18   ;;  %p1822_p1 = scmp.ne.s32.totalorder %s1809_s25, 0 }
 0x2d4   : > { %p1823_p2 = scmp.ge.s32.totalorder %s1186_s21, 2  ;;  %s822_s22 = scalar_lea.sflag [#allocation4], %s821_s9 }
 0x2d6   : > { %p947_p6 = pnand %p1823_p2, %p1822_p1 }
 0x2d8   : > { %p948_p12 = pneg %p947_p6 }
 0x2da   : > { %1169 = dma.done.wait (%p948_p12), %s822_s22, 512  }
 0x2db   : > { %1171 = vsyncadd (%p948_p12), %s822_s22, 4294966784  ;;  %p19_p3 = scmp.ge.s32.totalorder %s1320_s17, 4   ;;  %s1824_s18 = smov %s1178_s19 }
 0x2dc   : > { %s1825_s19 = smov %s1182_s20  ;;  %s1826_s20 = smov %s1329_s28 }
 0x2dd   : > { %s1827_s21 = smov %s1320_s17  ;;  %21 = sbr.rel (!%p19_p3) target bundleno = 6 (0x6), region = 93 }
 0x2e2   :  { %827 = vsyncpa [#allocation3], 1 }
 0x2e3   :  { %829 = vsyncpa [#allocation3 + $0x1], 1 }
 0x2e4   :  { %830 = vsyncpa [#allocation6], 1 }
 0x2e5   :  { %831 = vsyncpa [#allocation4], 1 }
 0x2e6   :  { %833 = vsyncpa [#allocation4 + $0x1], 1 }

</bundles_post_ra>
